<compile_context>
chip_gen: v6e
topology: v6e:2x2x1
jax: 0.10.0
libtpu: 0.0.40
codegen_flags: <defaults>
</compile_context>

<pallas_src>
import functools

import jax
import jax.numpy as jnp
from jax.experimental import pallas as pl
from jax.experimental.pallas import tpu as pltpu

LANE = 128      # TPU lane width; hidden is padded to a multiple of this
SUBLANE = 8     # sublane group size; row tiles are multiples of this
MAX_TM = 256    # destination-row tile cap
MAX_LT = 512    # hidden (lane) tile cap


def _round_up(x, m):
    return (x + m - 1) // m * m


_VMEM_LIMIT = None


def _vmem_limit_bytes():
    """~3/4 of physical VMEM: ~96 MiB on v5e/v6e, ~48 MiB on v7x."""
    global _VMEM_LIMIT
    if _VMEM_LIMIT is None:
        try:
            cap = int(pltpu.get_tpu_info().vmem_capacity_bytes)
        except Exception:
            cap = 64 * 1024 * 1024          # conservative fallback (v7x physical)
        _VMEM_LIMIT = max(32 * 1024 * 1024, min(cap * 3 // 4, 100 * 1024 * 1024))
    return _VMEM_LIMIT


def _pick_row_tile(n_needed):
    return min(_round_up(max(n_needed, 1), SUBLANE), MAX_TM)


def _pick_lane_tile(hp):
    for lt in (MAX_LT, 256, LANE):
        if hp % lt == 0:
            return lt
    return LANE


# ------------------------ unified ELL gather-sum kernel ---------------------- #

def _gather_sum_kernel(idx_ref, src_ref, o_ref, *, tm, deg, scale):
    """o[j] = scale * sum_d src[idx[j*deg + d]] for the tm rows of this tile.

    idx_ref : SMEM, flattened (n_dst_p * deg,) int32 gather table
    src_ref : VMEM (n_src_p, lane_tile) source slab for the current hidden tile
    o_ref   : VMEM (tm, lane_tile) output tile

    Rows are produced in sublane-groups of 8 so every HBM-bound store is one
    full, unmasked (8, lane_tile) tile instead of 8 masked (1, lane) stores.
    """
    row0 = pl.program_id(1) * tm

    def chunk(c, carry):
        r0 = row0 + c * SUBLANE
        rows = []
        for r in range(SUBLANE):                       # static 8-row unroll
            base = (r0 + r) * deg
            acc = src_ref[pl.ds(idx_ref[base], 1), :]  # dynamic sublane gather
            for d in range(1, deg):                    # deg is tiny and static
                acc = acc + src_ref[pl.ds(idx_ref[base + d], 1), :]
            rows.append(acc)
        block = jnp.concatenate(rows, axis=0)          # (8, lane_tile)
        if scale != 1.0:
            block = block * scale
        start = pl.multiple_of(c * SUBLANE, SUBLANE)
        o_ref[pl.ds(start, SUBLANE), :] = block        # one dense store / 8 rows
        return carry

    jax.lax.fori_loop(0, tm // SUBLANE, chunk, 0)


def _gather_sum_call(src_p, idx_flat, *, n_dst_p, deg, scale, tm, lt):
    n_src_p, hp = src_p.shape
    # rows innermost: the src block index (0, h) is constant across the inner
    # axis, so the source slab is DMA'd once per hidden tile.
    grid = (hp // lt, n_dst_p // tm)
    kernel = functools.partial(_gather_sum_kernel, tm=tm, deg=deg, scale=scale)
    return pl.pallas_call(
        kernel,
        out_shape=jax.ShapeDtypeStruct((n_dst_p, hp), jnp.float32),
        grid_spec=pltpu.PrefetchScalarGridSpec(
            num_scalar_prefetch=1,                     # ELL gather indices -> SMEM
            grid=grid,
            in_specs=[pl.BlockSpec((n_src_p, lt), lambda h, j, idx: (0, h))],
            out_specs=pl.BlockSpec((tm, lt), lambda h, j, idx: (j, h))),
        compiler_params=pltpu.CompilerParams(
            dimension_semantics=("parallel", "parallel"),
            vmem_limit_bytes=_vmem_limit_bytes()),
        cost_estimate=pl.CostEstimate(
            flops=2 * n_dst_p * hp * deg,
            transcendentals=0,
            bytes_accessed=4 * (n_src_p * hp + n_dst_p * hp + idx_flat.size)),
    )(idx_flat, src_p)


# ------------------ scatter_add -> fixed-degree ELL gather table ------------- #

def _ell_from_boundary(src, dst, *, n_dst, n_dst_p, deg, pad_src):
    """Convert (src, dst) scatter_add pairs into a flattened (n_dst_p*deg,) table.

    Unused slots (rows with fewer than `deg` entries and padding rows) point at
    `pad_src`, which must index an all-zero row of the source array.  Duplicate
    (src, dst) pairs get distinct slots, so additive semantics are preserved.
    """
    src = src.astype(jnp.int32)
    dst = dst.astype(jnp.int32)
    nnz = src.shape[0]
    counts = jnp.bincount(dst, length=n_dst)
    # Fail loudly (when concrete) instead of silently dropping over-degree entries.
    try:
        max_c = int(counts.max()) if (n_dst > 0 and nnz > 0) else 0
        if max_c > deg:
            raise ValueError(
                f"a destination cell has {max_c} boundary entries, exceeding the "
                f"declared maximum degree {deg}; raise max_*_deg accordingly")
    except (jax.errors.ConcretizationTypeError,
            jax.errors.TracerIntegerConversionError):
        pass  # under tracing: the caller is responsible for the degree bound
    order = jnp.argsort(dst)
    dst_s, src_s = dst[order], src[order]
    starts = jnp.concatenate([jnp.zeros((1,), counts.dtype), jnp.cumsum(counts)[:-1]])
    rank = jnp.arange(nnz, dtype=jnp.int32) - starts[dst_s].astype(jnp.int32)
    ell = jnp.full((n_dst_p, deg), pad_src, jnp.int32)
    ell = ell.at[dst_s, rank].set(src_s)
    return ell.reshape(-1)


# ----------------------------------- wrapper --------------------------------- #

def embed_abr_forward(x_v, embed_table,
                      boundary_e=None, n_e=None, max_e_deg=2,
                      boundary_c=None, n_c=None, max_c_deg=3):
    """EmbedABR.forward: returns [vx] / [vx, ex] / [vx, ex, cx]."""
    n_v, atom_types = x_v.shape
    hidden = embed_table.shape[1]
    hp = _round_up(hidden, LANE)
    lt = _pick_lane_tile(hp)

    # Tiny integer preprocessing in plain JAX (hoisted out of the kernels).
    node_type = jnp.argmax(x_v, axis=1).astype(jnp.int32)

    # Embedding table padded lane-dense with a guaranteed all-zero pad row.
    pad_row = atom_types
    emb_rows = _round_up(atom_types + 1, SUBLANE)
    emb_p = jnp.zeros((emb_rows, hp), jnp.float32).at[:atom_types, :hidden].set(
        embed_table.astype(jnp.float32))

    # ---- vertices: vx[i] = emb[node_type[i]]  (deg-1 gather) ----
    tm_v = _pick_row_tile(n_v)
    n_v_p = _round_up(max(n_v, 1), tm_v)
    vid = jnp.full((n_v_p,), pad_row, jnp.int32).at[:n_v].set(node_type)
    vx_p = _gather_sum_call(emb_p, vid, n_dst_p=n_v_p, deg=1, scale=1.0,
                            tm=tm_v, lt=lt)
    out = [vx_p[:n_v, :hidden]]

    if boundary_e is not None:
        # ---- edges: ex[j] = sum_{v in bnd(j)} vx[v] = sum emb[node_type[v]] ----
        tm_e = _pick_row_tile(n_e + 1)
        n_e_p = _round_up(n_e + 1, tm_e)   # +1: guaranteed zero row for cell gathers
        e_ell = _ell_from_boundary(boundary_e[0], boundary_e[1], n_dst=n_e,
                                   n_dst_p=n_e_p, deg=max_e_deg, pad_src=n_v)
        # Compose vertex ids with node types so the edge stage gathers straight
        # from the tiny embedding table (no full-vx VMEM residency).
        node_type_ext = jnp.concatenate(
            [node_type, jnp.full((1,), pad_row, jnp.int32)])
        e_idx = node_type_ext[e_ell]
        ex_p = _gather_sum_call(emb_p, e_idx, n_dst_p=n_e_p, deg=max_e_deg,
                                scale=1.0, tm=tm_e, lt=lt)
        out.append(ex_p[:n_e, :hidden])

        if boundary_c is not None:
            # ---- 2-cells: cx[j] = 0.5 * sum_{e in bnd(j)} ex[e] ----
            tm_c = _pick_row_tile(n_c)
            n_c_p = _round_up(max(n_c, 1), tm_c)
            c_idx = _ell_from_boundary(boundary_c[0], boundary_c[1], n_dst=n_c,
                                       n_dst_p=n_c_p, deg=max_c_deg, pad_src=n_e)
            cx_p = _gather_sum_call(ex_p, c_idx, n_dst_p=n_c_p, deg=max_c_deg,
                                    scale=0.5, tm=tm_c, lt=lt)
            out.append(cx_p[:n_c, :hidden])
    return out


# ------------------------------------ main ------------------------------------ #

if __name__ == "__main__":
    atom_types = 8
    hidden = 32
    n_v, n_e, n_c = 12, 10, 4

    key = jax.random.PRNGKey(0)
    k_emb, k_atom, k_esrc, k_csrc = jax.random.split(key, 4)

    embed_table = jax.random.normal(k_emb, (atom_types, hidden), jnp.float32)

    # vertex features: one-hot atom types (what argmax expects)
    atom_ids = jax.random.randint(k_atom, (n_v,), 0, atom_types)
    x_v = jax.nn.one_hot(atom_ids, atom_types, dtype=jnp.float32)

    # each edge has 2 boundary vertices
    e_src = jax.random.randint(k_esrc, (2 * n_e,), 0, n_v)
    e_dst = jnp.repeat(jnp.arange(n_e), 2)
    boundary_e = jnp.stack([e_src, e_dst]).astype(jnp.int32)

    # each 2-cell (triangle) has 3 boundary edges
    c_src = jax.random.randint(k_csrc, (3 * n_c,), 0, n_e)
    c_dst = jnp.repeat(jnp.arange(n_c), 3)
    boundary_c = jnp.stack([c_src, c_dst]).astype(jnp.int32)

    vx, ex, cx = embed_abr_forward(
        x_v, embed_table,
        boundary_e=boundary_e, n_e=n_e, max_e_deg=2,
        boundary_c=boundary_c, n_c=n_c, max_c_deg=3)
    vx, ex, cx = jax.block_until_ready((vx, ex, cx))

    # pure-JAX reference of the module's forward
    node_type = jnp.argmax(x_v, axis=1)
    vx_ref = embed_table[node_type]
    ex_ref = jnp.zeros((n_e, hidden), jnp.float32).at[boundary_e[1]].add(
        vx_ref[boundary_e[0]])
    cx_ref = jnp.zeros((n_c, hidden), jnp.float32).at[boundary_c[1]].add(
        ex_ref[boundary_c[0]]) / 2.0

    assert vx.shape == (n_v, hidden)
    assert ex.shape == (n_e, hidden)
    assert cx.shape == (n_c, hidden)
    assert jnp.allclose(vx, vx_ref, rtol=1e-5, atol=1e-5)
    assert jnp.allclose(ex, ex_ref, rtol=1e-5, atol=1e-5)
    assert jnp.allclose(cx, cx_ref, rtol=1e-5, atol=1e-5)
    print("KERNEL_OK")
</pallas_src>

<mosaic_0001>
module attributes {stable_mosaic.version = 11 : i64} {
  func.func @_gather_sum_kernel(%arg0: i32, %arg1: i32, %arg2: memref<16xi32, #tpu.memory_space<smem>>, %arg3: memref<16x128xf32, #tpu.memory_space<vmem>>, %arg4: memref<16x128xf32, #tpu.memory_space<vmem>>) attributes {dimension_semantics = [#tpu.dimension_semantics<parallel>, #tpu.dimension_semantics<parallel>], iteration_bounds = array<i64: 1, 1>, scalar_prefetch = 1 : i64, scratch_operands = 0 : i64, tpu.core_type = #tpu.core_type<tc>, window_params = [{transform_indices = @transform_0, window_bounds = array<i64: 16, 128>}, {transform_indices = @transform_1, window_bounds = array<i64: 16, 128>}]} {
    %c16_i32 = arith.constant 16 : i32
    %0 = arith.muli %arg1, %c16_i32 : i32
    %c0_i32 = arith.constant 0 : i32
    %c2_i32 = arith.constant 2 : i32
    %1 = arith.addi %c0_i32, %c2_i32 : i32
    %c1_i32 = arith.constant 1 : i32
    scf.for %arg5 = %c0_i32 to %1 step %c1_i32  : i32 {
      %c8_i32 = arith.constant 8 : i32
      %2 = arith.muli %arg5, %c8_i32 : i32
      %3 = arith.addi %0, %2 : i32
      %c0_i32_1 = arith.constant 0 : i32
      %4 = arith.addi %3, %c0_i32_1 : i32
      %c1_i32_2 = arith.constant 1 : i32
      %5 = arith.muli %4, %c1_i32_2 : i32
      %6 = arith.index_cast %5 : i32 to index
      %7 = memref.load %arg2[%6] : memref<16xi32, #tpu.memory_space<smem>>
      %8 = arith.index_cast %7 : i32 to index
      %c0 = arith.constant 0 : index
      %9 = vector.load %arg3[%8, %c0] : memref<16x128xf32, #tpu.memory_space<vmem>>, vector<1x128xf32>
      %c1_i32_3 = arith.constant 1 : i32
      %10 = arith.addi %3, %c1_i32_3 : i32
      %c1_i32_4 = arith.constant 1 : i32
      %11 = arith.muli %10, %c1_i32_4 : i32
      %12 = arith.index_cast %11 : i32 to index
      %13 = memref.load %arg2[%12] : memref<16xi32, #tpu.memory_space<smem>>
      %14 = arith.index_cast %13 : i32 to index
      %c0_5 = arith.constant 0 : index
      %15 = vector.load %arg3[%14, %c0_5] : memref<16x128xf32, #tpu.memory_space<vmem>>, vector<1x128xf32>
      %c2_i32_6 = arith.constant 2 : i32
      %16 = arith.addi %3, %c2_i32_6 : i32
      %c1_i32_7 = arith.constant 1 : i32
      %17 = arith.muli %16, %c1_i32_7 : i32
      %18 = arith.index_cast %17 : i32 to index
      %19 = memref.load %arg2[%18] : memref<16xi32, #tpu.memory_space<smem>>
      %20 = arith.index_cast %19 : i32 to index
      %c0_8 = arith.constant 0 : index
      %21 = vector.load %arg3[%20, %c0_8] : memref<16x128xf32, #tpu.memory_space<vmem>>, vector<1x128xf32>
      %c3_i32 = arith.constant 3 : i32
      %22 = arith.addi %3, %c3_i32 : i32
      %c1_i32_9 = arith.constant 1 : i32
      %23 = arith.muli %22, %c1_i32_9 : i32
      %24 = arith.index_cast %23 : i32 to index
      %25 = memref.load %arg2[%24] : memref<16xi32, #tpu.memory_space<smem>>
      %26 = arith.index_cast %25 : i32 to index
      %c0_10 = arith.constant 0 : index
      %27 = vector.load %arg3[%26, %c0_10] : memref<16x128xf32, #tpu.memory_space<vmem>>, vector<1x128xf32>
      %c4_i32 = arith.constant 4 : i32
      %28 = arith.addi %3, %c4_i32 : i32
      %c1_i32_11 = arith.constant 1 : i32
      %29 = arith.muli %28, %c1_i32_11 : i32
      %30 = arith.index_cast %29 : i32 to index
      %31 = memref.load %arg2[%30] : memref<16xi32, #tpu.memory_space<smem>>
      %32 = arith.index_cast %31 : i32 to index
      %c0_12 = arith.constant 0 : index
      %33 = vector.load %arg3[%32, %c0_12] : memref<16x128xf32, #tpu.memory_space<vmem>>, vector<1x128xf32>
      %c5_i32 = arith.constant 5 : i32
      %34 = arith.addi %3, %c5_i32 : i32
      %c1_i32_13 = arith.constant 1 : i32
      %35 = arith.muli %34, %c1_i32_13 : i32
      %36 = arith.index_cast %35 : i32 to index
      %37 = memref.load %arg2[%36] : memref<16xi32, #tpu.memory_space<smem>>
      %38 = arith.index_cast %37 : i32 to index
      %c0_14 = arith.constant 0 : index
      %39 = vector.load %arg3[%38, %c0_14] : memref<16x128xf32, #tpu.memory_space<vmem>>, vector<1x128xf32>
      %c6_i32 = arith.constant 6 : i32
      %40 = arith.addi %3, %c6_i32 : i32
      %c1_i32_15 = arith.constant 1 : i32
      %41 = arith.muli %40, %c1_i32_15 : i32
      %42 = arith.index_cast %41 : i32 to index
      %43 = memref.load %arg2[%42] : memref<16xi32, #tpu.memory_space<smem>>
      %44 = arith.index_cast %43 : i32 to index
      %c0_16 = arith.constant 0 : index
      %45 = vector.load %arg3[%44, %c0_16] : memref<16x128xf32, #tpu.memory_space<vmem>>, vector<1x128xf32>
      %c7_i32 = arith.constant 7 : i32
      %46 = arith.addi %3, %c7_i32 : i32
      %c1_i32_17 = arith.constant 1 : i32
      %47 = arith.muli %46, %c1_i32_17 : i32
      %48 = arith.index_cast %47 : i32 to index
      %49 = memref.load %arg2[%48] : memref<16xi32, #tpu.memory_space<smem>>
      %50 = arith.index_cast %49 : i32 to index
      %c0_18 = arith.constant 0 : index
      %51 = vector.load %arg3[%50, %c0_18] : memref<16x128xf32, #tpu.memory_space<vmem>>, vector<1x128xf32>
      %52 = tpu.concatenate %9, %15, %21, %27, %33, %39, %45, %51 in 0 : vector<1x128xf32>, vector<1x128xf32>, vector<1x128xf32>, vector<1x128xf32>, vector<1x128xf32>, vector<1x128xf32>, vector<1x128xf32>, vector<1x128xf32> -> vector<8x128xf32>
      %c8_i32_19 = arith.constant 8 : i32
      %53 = arith.muli %arg5, %c8_i32_19 : i32
      %54 = tpu.assume_multiple %53, 8 : i32
      %55 = arith.index_cast %54 : i32 to index
      %c0_20 = arith.constant 0 : index
      %56 = vector.load %arg4[%55, %c0_20] : memref<16x128xf32, #tpu.memory_space<vmem>>, vector<8x128xf32>
      tpu.vector_store %arg4[%55, %c0_20], %52 {strides = array<i32>} : memref<16x128xf32, #tpu.memory_space<vmem>>, vector<8x128xf32>,
    }
    %c2_i32_0 = arith.constant 2 : i32
    return
  }
  func.func @transform_0(%arg0: i32, %arg1: i32, %arg2: memref<16xi32, #tpu.memory_space<smem>>) -> (i32, i32) {
    %c0_i32 = arith.constant 0 : i32
    %c0_i32_0 = arith.constant 0 : i32
    return %c0_i32, %arg0 : i32, i32
  }
  func.func @transform_1(%arg0: i32, %arg1: i32, %arg2: memref<16xi32, #tpu.memory_space<smem>>) -> (i32, i32) {
    %c0_i32 = arith.constant 0 : i32
    return %arg1, %arg0 : i32, i32
  }
}

</mosaic_0001>

<bundles_post_ra>
// kernel: tpu_custom_call.1
= control target key start
LH: loop header
LB: loop body
LE: loop exit
PB: predicated region body
PF: predicated region fallthrough
CT: control target
= control target key end

     0   :  { %s213_s9 = smov [#allocation3]   ;;  %s269_s0 = inlined_call_operand.hbm [shape: s32[16], index: 0, kind: input, shape index: {}]   ;;  %s270_s1 = inlined_call_operand.hbm [shape: f32[16,128], index: 1, kind: input, shape index: {}]   ;;  %s271_s2 = inlined_call_operand.hbm [shape: f32[16,128], index: 2, kind: output, shape index: {}]  }
   0x1   :  { %8 = dma.hbm_to_smem %s269_s0, 16, %s213_s9, [#allocation2] }
   0x2   :  { %203 = dma.done.wait [#allocation2], 16 }
   0x3   :  { %204 = vsyncadd [#allocation2], 4294967280 }
   0x4   :  { %10 = sfence }
   0x5   :  { %11 = vsyncpa [#allocation5], 0 }
   0x6   :  { %12 = vsyncpa [#allocation6], 0  ;;  %s214_s12 = smov [#allocation4]  }
   0x7   :  { %s18_s13 = sshll.u32 %s214_s12, 4  ;;  %s19_s13 = int_to_ptr.vmem [resolvable:$true] %s18_s13 }
   0x8   :  { %s167_s14 = scalar_lea.vmem %s19_s13, 256  ;;  %p172_p1 = scmp.lt.s32.totalorder %s19_s13, %s19_s13 }
   0x9   :  { %p168_p0 = scmp.ne.s32.totalorder %s19_s13, %s167_s14  ;;  %p173_p2 = scmp.lt.s32.totalorder %s167_s14, %s167_s14 }
   0xb   :  { %p174_p3 = por %p173_p2, %p172_p1 }
   0xd   :  { %p175_p4 = pnand %p174_p3, %p168_p0 }
   0xf   :  { %178 = shalt.err (!%p175_p4)
}
  0x10   :  { %s215_s15 = smov 128   ;;  %s216_s16 = smov 8  }
  0x11   :  { %24 = dma.hbm_to_vmem [thread:$0]  %s270_s1, 256, %s19_s13, [#allocation5], %s215_s15, %s215_s15, %s216_s16  }
  0x12   :  { %205 = dma.done.wait [#allocation5], 256  }
  0x13   :  { %206 = vsyncadd [#allocation5], 4294967040  ;;  %s242_s18 = smov 0  }
  0x14 LB: > { %s248_s19 = sshll.u32 %s211_s18, 3  ;;  %vm89_vm0 = vcmask 1040384   ;;  %vm91_vm1 = vcmask 1041408   ;;  %vm93_vm2 = vcmask 1042432   ;;  %vm95_vm3 = vcmask 1043456   ;;  %s34_s18 = sadd.s32 1, %s211_s18   ;;  %s211_s18 = sphi %s242_s18, %s34_s18  }
  0x15   : > { %s37_s1 = sld [smem:[#allocation3 + %s248_s19]]  ;;  %s40_s20 = sadd.s32 1, %s248_s19  ;;  %vm97_vm4 = vcmask 1044480   ;;  %vm99_vm5 = vcmask 1045504   ;;  %vm101_vm6 = vcmask 1046528  }
  0x16   : > { %s41_s21 = sld [smem:[#allocation3 + %s40_s20]]  ;;  %s44_s22 = sadd.s32 2, %s248_s19 }
  0x17   : > { %s45_s23 = sld [smem:[#allocation3 + %s44_s22]]  ;;  %s48_s24 = sadd.s32 3, %s248_s19 }
  0x18   : > { %s49_s25 = sld [smem:[#allocation3 + %s48_s24]]  ;;  %s52_s26 = sadd.s32 4, %s248_s19 }
  0x19   : > { %s53_s27 = sld [smem:[#allocation3 + %s52_s26]]  ;;  %s56_s28 = sadd.s32 5, %s248_s19 }
  0x1a   : > { %s57_s29 = sld [smem:[#allocation3 + %s56_s28]]  ;;  %s60_s30 = sadd.s32 6, %s248_s19 }
  0x1b   : > { %s61_s3 = sld [smem:[#allocation3 + %s60_s30]]  ;;  %s64_s4 = sadd.s32 7, %s248_s19 }
  0x1c   : > { %s38_s5 = scalar_lea.vmem [#allocation4], %s37_s1  ;;  %s42_s6 = scalar_lea.vmem [#allocation4], %s41_s21 }
  0x1d   : > { %v39_v0 = vld [vmem:[%s38_s5] sm:$0x1]  ;;  %s65_s7 = sld [smem:[#allocation3 + %s64_s4]]  ;;  %s46_s8 = scalar_lea.vmem [#allocation4], %s45_s23 }
  0x1e   : > { %v43_v1 = vld [vmem:[%s42_s6] sm:$0x1]  ;;  %s50_s9 = scalar_lea.vmem [#allocation4], %s49_s25  ;;  %s103_s14 = scalar_lea.vmem [#allocation7], %s248_s19 }
  0x1f   : > { %v47_v2 = vld [vmem:[%s46_s8] sm:$0x1]  ;;  %v69_v3 = vrot.slane %v43_v1, 7  ;;  %s54_s10 = scalar_lea.vmem [#allocation4], %s53_s27  ;;  %p31_p5 = scmp.ge.s32.totalorder %s34_s18, 2  }
  0x20   : > { %v51_v4 = vld [vmem:[%s50_s9] sm:$0x1]  ;;  %v72_v5 = vrot.slane %v47_v2, 6  ;;  %s58_s11 = scalar_lea.vmem [#allocation4], %s57_s29  ;;  %s217_s0 = smov (%p31_p5), [#allocation7]  }
  0x21   : > { %v55_v6 = vld [vmem:[%s54_s10] sm:$0x1]  ;;  %v75_v7 = vrot.slane %v51_v4, 5  ;;  %v90_v8 = vsel %vm89_vm0, %v39_v0, %v69_v3  ;;  %s62_s12 = scalar_lea.vmem [#allocation4], %s61_s3  ;;  %s110_s17 = sshll.u32 (%p31_p5), %s217_s0, 4  ;;  %s111_s17 = int_to_ptr.vmem [resolvable:$true] %s110_s17 }
  0x22   : > { %v59_v9 = vld [vmem:[%s58_s11] sm:$0x1]  ;;  %v78_v10 = vrot.slane %v55_v6, 4  ;;  %v92_v11 = vsel %vm91_vm1, %v90_v8, %v72_v5  ;;  %s179_s1 = scalar_lea.vmem (%p31_p5), %s111_s17, 256  ;;  %p184_p7 = scmp.lt.s32.totalorder (%p31_p5), %s111_s17, %s111_s17 }
  0x23   : > { %v63_v12 = vld [vmem:[%s62_s12] sm:$0x1]  ;;  %v81_v13 = vrot.slane %v59_v9, 3  ;;  %v94_v14 = vsel %vm93_vm2, %v92_v11, %v75_v7  ;;  %s66_s13 = scalar_lea.vmem [#allocation4], %s65_s7  ;;  %p180_p6 = scmp.ne.s32.totalorder (%p31_p5), %s111_s17, %s179_s1 }
  0x24   : > { %v84_v15 = vrot.slane %v63_v12, 2  ;;  %v96_v16 = vsel %vm95_vm3, %v94_v14, %v78_v10  ;;  %v67_v17 = vld [vmem:[%s66_s13] sm:$0x1]  ;;  %33 = sbr.rel (!%p31_p5) target bundleno = 20 (0x14), region = 44  ;;  %p185_p8 = scmp.lt.s32.totalorder (%p31_p5), %s179_s1, %s179_s1 }
  0x25   : > { %v98_v18 = vsel %vm97_vm4, %v96_v16, %v81_v13  ;;  %v87_v19 = vrot.slane %v67_v17, 1 }
  0x26   : > { %v100_v20 = vsel %vm99_vm5, %v98_v18, %v84_v15  ;;  %p186_p9 = por (%p31_p5), %p185_p8, %p184_p7 }
  0x27   : > { %v102_v21 = vsel %vm101_vm6, %v100_v20, %v87_v19 }
  0x28   : > { %104 = vst [vmem:[%s103_s14] sm:$0xff] %v102_v21  ;;  %p187_p10 = pnand (%p31_p5), %p186_p9, %p180_p6 }
  0x2a   :  { %190 = shalt.err (!%p187_p10)
}
  0x2b   :  { %116 = dma.vmem_to_hbm [thread:$0]  %s111_s17, 256, %s271_s2, [#allocation6], %s215_s15, %s215_s15, %s216_s16  }
  0x2c   :  { %207 = dma.done.wait [#allocation6], 256  }
  0x2d   :  { %208 = vsyncadd [#allocation6], 4294967040 }
  0x2e   :  { %120 = vsyncpa [#allocation5], 1 }
  0x2f   :  { %121 = vsyncpa [#allocation6], 1 }

</bundles_post_ra>
